<compile_context>
chip_gen: v7x
topology: tpu7x:2x2x1
jax: 0.10.0
libtpu: 0.0.40
codegen_flags: <defaults>
</compile_context>

<pallas_src>
import math
import jax
import jax.numpy as jnp
from jax.experimental import pallas as pl
from jax.experimental.pallas import tpu as pltpu

LN_EPS = 1e-5  # PyTorch nn.LayerNorm default


def _layernorm(x, gamma, beta):
    mu = jnp.mean(x, axis=-1, keepdims=True)
    var = jnp.mean((x - mu) ** 2, axis=-1, keepdims=True)
    xhat = (x - mu) * jax.lax.rsqrt(var + LN_EPS)
    return xhat * gamma + beta


def joint_kernel(x_ref, cin_vec_ref, cout_vec_ref, b1_ref, bqkv_ref, bf1_ref,
                 w1_ref, wp_ref, wqkv_ref, wf1_ref, wf2_ref, out_ref):
    Bt, S, Cin = x_ref.shape
    Cout = wp_ref.shape[1]
    M = Bt * S

    # Fold (Bt, S) into a single M dimension for all channel-wise matmuls.
    x = x_ref[...].astype(jnp.float32).reshape(M, Cin)

    # Packed small parameters (rows of the consolidated arrays).
    in_g, in_b = cin_vec_ref[0], cin_vec_ref[1]
    bp = cout_vec_ref[0]
    n1g, n1b = cout_vec_ref[1], cout_vec_ref[2]
    bf2 = cout_vec_ref[3]
    n2g, n2b = cout_vec_ref[4], cout_vec_ref[5]
    fg, fb = cout_vec_ref[6], cout_vec_ref[7]

    def mm(a, w_ref):
        # bf16 operands feed the MXU at native rate; accumulate in f32.
        return jnp.dot(a.astype(jnp.bfloat16), w_ref[...],
                       preferred_element_type=jnp.float32)

    # ---- Joint.input_norm ----
    x = _layernorm(x, in_g, in_b)

    # ---- Joint.mlp: Linear + ReLU (Dropout == identity in eval) ----
    h = jnp.maximum(mm(x, w1_ref) + b1_ref[0], 0.0)

    # ---- Joint.proj + clamp ----
    y = jnp.clip(mm(h, wp_ref) + bp, -100.0, 100.0)            # (M, Cout)

    # ---- Block: self-attention (fused q|k|v projection) ----
    identity = y
    qkv = mm(y, wqkv_ref) + bqkv_ref[0]                         # (M, 3*Cout)
    # Attention scale is already folded into the q slice (weights + bias).
    q = qkv[:, :Cout].reshape(Bt, S, Cout).astype(jnp.bfloat16)
    k = qkv[:, Cout:2 * Cout].reshape(Bt, S, Cout).astype(jnp.bfloat16)
    v = qkv[:, 2 * Cout:].reshape(Bt, S, Cout).astype(jnp.bfloat16)

    # Batched q @ k^T via einsum (MXU consumes k with a transposed
    # contraction directly — no explicit XLU transpose / VMEM copy).
    scores = jnp.einsum("bqd,bkd->bqk", q, k,
                        preferred_element_type=jnp.float32)
    scores = scores - jnp.max(scores, axis=-1, keepdims=True)
    e = jnp.exp(scores)
    denom = jnp.sum(e, axis=-1, keepdims=True)
    attn = e * pl.reciprocal(denom, approx=True)                # EUP reciprocal
    attn_out = jnp.einsum("bqk,bkd->bqd", attn.astype(jnp.bfloat16), v,
                          preferred_element_type=jnp.float32).reshape(M, Cout)

    y = identity + attn_out                                     # dropout == id
    y = _layernorm(y, n1g, n1b)

    # ---- Block: FFN ----
    identity = y
    f = jnp.maximum(mm(y, wf1_ref) + bf1_ref[0], 0.0)
    f = mm(f, wf2_ref) + bf2
    y = _layernorm(identity + f, n2g, n2b)

    # ---- Joint.norm ----
    y = _layernorm(y, fg, fb)

    out_ref[...] = y.reshape(Bt, S, Cout).astype(out_ref.dtype)


def make_joint_params(key, in_channels, hidden_channels, out_channels):
    """Deterministic synthetic parameters (PyTorch Linear stored pre-transposed)."""
    ks = jax.random.split(key, 16)
    f32 = jnp.float32

    def lin(k, fan_in, fan_out):
        w = jax.random.normal(k, (fan_in, fan_out), f32) * 0.02
        b = jnp.zeros((1, fan_out), f32)
        return w, b

    p = {}
    p["in_g"] = jnp.ones((1, in_channels), f32)
    p["in_b"] = jnp.zeros((1, in_channels), f32)
    p["w1"], p["b1"] = lin(ks[0], in_channels, hidden_channels)
    p["wp"], p["bp"] = lin(ks[1], hidden_channels, out_channels)
    p["scale"] = jnp.full((1, 1), 1.0 / math.sqrt(out_channels), f32)
    p["wq"], p["bq"] = lin(ks[2], out_channels, out_channels)
    p["wk"], p["bk"] = lin(ks[3], out_channels, out_channels)
    p["wv"], p["bv"] = lin(ks[4], out_channels, out_channels)
    p["n1g"] = jnp.ones((1, out_channels), f32)
    p["n1b"] = jnp.zeros((1, out_channels), f32)
    p["wf1"], p["bf1"] = lin(ks[5], out_channels, 4 * out_channels)
    p["wf2"], p["bf2"] = lin(ks[6], 4 * out_channels, out_channels)
    p["n2g"] = jnp.ones((1, out_channels), f32)
    p["n2b"] = jnp.zeros((1, out_channels), f32)
    p["fg"] = jnp.ones((1, out_channels), f32)
    p["fb"] = jnp.zeros((1, out_channels), f32)
    return p


def _vmem_caps():
    """(physical_vmem, vmem_limit_bytes) — generation aware with safe fallback."""
    try:
        cap = int(pltpu.get_tpu_info().vmem_capacity_bytes)
    except Exception:
        cap = 64 << 20  # conservative: v7x-sized per-TC VMEM
    if cap >= (128 << 20):
        # v5e / v6e: lift the scoped limit well above the old 64 MiB clamp.
        return cap, 100 << 20
    # v7x-class (64 MiB physical): leave headroom under the physical limit.
    return cap, max(16 << 20, min(cap - (8 << 20), 56 << 20))


def _activation_bytes(bt, S, Cin, H, Cout):
    """Rough upper bound on in-kernel intermediate VMEM for one grid step."""
    M = bt * S
    F32, BF16 = 4, 2
    b = 0
    b += M * Cin * (F32 + BF16)             # x (f32) + bf16 cast
    b += M * H * (F32 + BF16)               # mlp hidden + cast
    b += 3 * M * Cout * F32                 # y / identity / attn_out
    b += M * 3 * Cout * (F32 + 3 * BF16)    # fused qkv + bf16 q/k/v
    b += bt * S * S * (3 * F32 + BF16)      # scores, e, attn (+ bf16 cast)
    b += M * 4 * Cout * (F32 + BF16)        # FFN hidden + cast
    return b


def _pick_bt(B, S, Cin, H, Cout, x_itemsize, out_itemsize, const_bytes,
             vmem_budget, target_rows=1024):
    """Largest admissible divisor Bt of B.

    Constraints: Bt*S <= ~target_rows; at least 2 grid steps when B >= 2
    (v7x megacore + pipelining); total VMEM estimate (double-buffered I/O
    tiles + double-buffered constants + intermediates) within budget.
    Preference: M = Bt*S a multiple of 256, then 128, then largest.
    """
    cap_rows = max(target_rows, S)
    best_key, best_bt = None, 1
    for bt in range(1, B + 1):
        if B % bt:
            continue
        if B >= 2 and B // bt < 2:
            continue
        if bt * S > cap_rows:
            continue
        io = 2 * bt * S * (Cin * x_itemsize + Cout * out_itemsize)
        total = io + 2 * const_bytes + _activation_bytes(bt, S, Cin, H, Cout)
        if total > vmem_budget:
            continue
        m = bt * S
        key = (m % 256 == 0, m % 128 == 0, m)
        if best_key is None or key > best_key:
            best_key, best_bt = key, bt
    return best_bt


def joint_forward(x, params):
    B, S, Cin = x.shape
    H = params["w1"].shape[1]
    Cout = params["wp"].shape[1]

    # Fold the attention scale into the q projection (weights + bias):
    #   (y@wq + bq) @ (y@wk + bk)^T * s == (y@(wq*s) + bq*s) @ (y@wk + bk)^T
    scale = params["scale"].reshape(())
    wqkv = jnp.concatenate(
        [params["wq"] * scale, params["wk"], params["wv"]], axis=1)      # (Cout, 3*Cout)
    bqkv = jnp.concatenate(
        [params["bq"] * scale, params["bk"], params["bv"]], axis=1)      # (1, 3*Cout)

    # Consolidate the many tiny (1, C) vectors into a few packed arrays
    # (fewer BlockSpecs / DMA descriptors / VMEM buffers).
    cin_vecs = jnp.concatenate([params["in_g"], params["in_b"]], axis=0)  # (2, Cin)
    cout_vecs = jnp.concatenate(
        [params["bp"], params["n1g"], params["n1b"], params["bf2"],
         params["n2g"], params["n2b"], params["fg"], params["fb"]],
        axis=0)                                                           # (8, Cout)

    # Weight matrices shipped as bf16 (MXU-native, half the VMEM footprint).
    bf16 = jnp.bfloat16
    w1 = params["w1"].astype(bf16)
    wp = params["wp"].astype(bf16)
    wqkv = wqkv.astype(bf16)
    wf1 = params["wf1"].astype(bf16)
    wf2 = params["wf2"].astype(bf16)

    const_operands = [cin_vecs, cout_vecs, params["b1"], bqkv, params["bf1"],
                      w1, wp, wqkv, wf1, wf2]
    const_bytes = sum(int(a.size) * a.dtype.itemsize for a in const_operands)

    x_itemsize = jnp.dtype(x.dtype).itemsize
    _, vmem_limit = _vmem_caps()

    Bt = _pick_bt(B, S, Cin, H, Cout, x_itemsize, x_itemsize, const_bytes,
                  vmem_budget=vmem_limit)
    grid = (B // Bt,)

    def const_spec(arr):
        return pl.BlockSpec(arr.shape, lambda b: (0, 0))

    in_specs = [
        pl.BlockSpec((Bt, S, Cin), lambda b: (b, 0, 0)),                  # x tile
        const_spec(cin_vecs),
        const_spec(cout_vecs),
        const_spec(params["b1"]),
        const_spec(bqkv),
        const_spec(params["bf1"]),
        const_spec(w1),
        const_spec(wp),
        const_spec(wqkv),
        const_spec(wf1),
        const_spec(wf2),
    ]
    out_spec = pl.BlockSpec((Bt, S, Cout), lambda b: (b, 0, 0))
    out_shape = jax.ShapeDtypeStruct((B, S, Cout), x.dtype)

    operands = [x, cin_vecs, cout_vecs, params["b1"], bqkv, params["bf1"],
                w1, wp, wqkv, wf1, wf2]

    fn = pl.pallas_call(
        joint_kernel,
        out_shape=out_shape,
        grid_spec=pltpu.PrefetchScalarGridSpec(
            num_scalar_prefetch=0,
            grid=grid,
            in_specs=in_specs,
            out_specs=out_spec,
        ),
        compiler_params=pltpu.CompilerParams(
            dimension_semantics=("parallel",),
            vmem_limit_bytes=int(vmem_limit)),
    )
    return fn(*operands)


def joint_reference(x, params):
    """Pure-JAX f32 reference (matches the PyTorch module in eval mode)."""
    def ln(v, g, b):
        mu = jnp.mean(v, -1, keepdims=True)
        var = jnp.mean((v - mu) ** 2, -1, keepdims=True)
        return (v - mu) / jnp.sqrt(var + LN_EPS) * g + b

    x = ln(x, params["in_g"][0], params["in_b"][0])
    h = jax.nn.relu(x @ params["w1"] + params["b1"][0])
    y = jnp.clip(h @ params["wp"] + params["bp"][0], -100.0, 100.0)

    identity = y
    q = y @ params["wq"] + params["bq"][0]
    k = y @ params["wk"] + params["bk"][0]
    v = y @ params["wv"] + params["bv"][0]
    scores = jnp.einsum("bqc,bkc->bqk", q, k) * params["scale"][0, 0]
    attn = jax.nn.softmax(scores, axis=-1)
    y = identity + jnp.einsum("bqk,bkc->bqc", attn, v)
    y = ln(y, params["n1g"][0], params["n1b"][0])

    identity = y
    f = jax.nn.relu(y @ params["wf1"] + params["bf1"][0]) @ params["wf2"] + params["bf2"][0]
    y = ln(identity + f, params["n2g"][0], params["n2b"][0])
    return ln(y, params["fg"][0], params["fb"][0])


if __name__ == "__main__":
    B, S = 2, 8
    in_channels, hidden_channels, out_channels = 32, 64, 32

    key = jax.random.PRNGKey(0)
    kx, kp = jax.random.split(key)
    x = jax.random.normal(kx, (B, S, in_channels), jnp.float32)
    params = make_joint_params(kp, in_channels, hidden_channels, out_channels)

    out = jax.block_until_ready(joint_forward(x, params))
    ref = joint_reference(x, params)

    assert out.shape == (B, S, out_channels)
    # bf16 MXU operands (with f32 accumulation) deviate from the strict f32
    # reference at the ~1e-2 level; tolerance loosened accordingly.
    assert jnp.allclose(out, ref, atol=5e-2, rtol=5e-2), "mismatch vs reference"

    print("KERNEL_OK")
</pallas_src>

<mosaic_0001>
module attributes {stable_mosaic.version = 11 : i64} {
  func.func @joint_kernel(%arg0: i32, %arg1: memref<1x8x32xf32, #tpu.memory_space<vmem>>, %arg2: memref<2x32xf32, #tpu.memory_space<vmem>>, %arg3: memref<8x32xf32, #tpu.memory_space<vmem>>, %arg4: memref<1x64xf32, #tpu.memory_space<vmem>>, %arg5: memref<1x96xf32, #tpu.memory_space<vmem>>, %arg6: memref<1x128xf32, #tpu.memory_space<vmem>>, %arg7: memref<32x64xbf16, #tpu.memory_space<vmem>>, %arg8: memref<64x32xbf16, #tpu.memory_space<vmem>>, %arg9: memref<32x96xbf16, #tpu.memory_space<vmem>>, %arg10: memref<32x128xbf16, #tpu.memory_space<vmem>>, %arg11: memref<128x32xbf16, #tpu.memory_space<vmem>>, %arg12: memref<1x8x32xf32, #tpu.memory_space<vmem>>) attributes {dimension_semantics = [#tpu.dimension_semantics<parallel>], iteration_bounds = array<i64: 2>, scalar_prefetch = 0 : i64, scratch_operands = 0 : i64, tpu.core_type = #tpu.core_type<tc>, window_params = [{transform_indices = @transform_0, window_bounds = array<i64: 1, 8, 32>}, {pipeline_mode = #tpu.pipeline_mode<synchronous>, transform_indices = @transform_1, window_bounds = array<i64: 2, 32>}, {pipeline_mode = #tpu.pipeline_mode<synchronous>, transform_indices = @transform_2, window_bounds = array<i64: 8, 32>}, {pipeline_mode = #tpu.pipeline_mode<synchronous>, transform_indices = @transform_3, window_bounds = array<i64: 1, 64>}, {pipeline_mode = #tpu.pipeline_mode<synchronous>, transform_indices = @transform_4, window_bounds = array<i64: 1, 96>}, {pipeline_mode = #tpu.pipeline_mode<synchronous>, transform_indices = @transform_5, window_bounds = array<i64: 1, 128>}, {pipeline_mode = #tpu.pipeline_mode<synchronous>, transform_indices = @transform_6, window_bounds = array<i64: 32, 64>}, {pipeline_mode = #tpu.pipeline_mode<synchronous>, transform_indices = @transform_7, window_bounds = array<i64: 64, 32>}, {pipeline_mode = #tpu.pipeline_mode<synchronous>, transform_indices = @transform_8, window_bounds = array<i64: 32, 96>}, {pipeline_mode = #tpu.pipeline_mode<synchronous>, transform_indices = @transform_9, window_bounds = array<i64: 32, 128>}, {pipeline_mode = #tpu.pipeline_mode<synchronous>, transform_indices = @transform_10, window_bounds = array<i64: 128, 32>}, {transform_indices = @transform_11, window_bounds = array<i64: 1, 8, 32>}]} {
    %c0 = arith.constant 0 : index
    %c0_0 = arith.constant 0 : index
    %c0_1 = arith.constant 0 : index
    %0 = vector.load %arg1[%c0, %c0_0, %c0_1] : memref<1x8x32xf32, #tpu.memory_space<vmem>>, vector<1x8x32xf32>
    %1 = vector.shape_cast %0 : vector<1x8x32xf32> to vector<8x32xf32>
    %c0_2 = arith.constant 0 : index
    %c0_3 = arith.constant 0 : index
    %2 = vector.load %arg2[%c0_2, %c0_3] : memref<2x32xf32, #tpu.memory_space<vmem>>, vector<1x32xf32>
    %3 = vector.shape_cast %2 : vector<1x32xf32> to vector<32xf32>
    %c1 = arith.constant 1 : index
    %c0_4 = arith.constant 0 : index
    %4 = vector.load %arg2[%c1, %c0_4] : memref<2x32xf32, #tpu.memory_space<vmem>>, vector<1x32xf32>
    %5 = vector.shape_cast %4 : vector<1x32xf32> to vector<32xf32>
    %c0_5 = arith.constant 0 : index
    %c0_6 = arith.constant 0 : index
    %6 = vector.load %arg3[%c0_5, %c0_6] : memref<8x32xf32, #tpu.memory_space<vmem>>, vector<1x32xf32>
    %7 = vector.shape_cast %6 : vector<1x32xf32> to vector<32xf32>
    %c1_7 = arith.constant 1 : index
    %c0_8 = arith.constant 0 : index
    %8 = vector.load %arg3[%c1_7, %c0_8] : memref<8x32xf32, #tpu.memory_space<vmem>>, vector<1x32xf32>
    %9 = vector.shape_cast %8 : vector<1x32xf32> to vector<32xf32>
    %c2 = arith.constant 2 : index
    %c0_9 = arith.constant 0 : index
    %10 = vector.load %arg3[%c2, %c0_9] : memref<8x32xf32, #tpu.memory_space<vmem>>, vector<1x32xf32>
    %11 = vector.shape_cast %10 : vector<1x32xf32> to vector<32xf32>
    %c3 = arith.constant 3 : index
    %c0_10 = arith.constant 0 : index
    %12 = vector.load %arg3[%c3, %c0_10] : memref<8x32xf32, #tpu.memory_space<vmem>>, vector<1x32xf32>
    %13 = vector.shape_cast %12 : vector<1x32xf32> to vector<32xf32>
    %c4 = arith.constant 4 : index
    %c0_11 = arith.constant 0 : index
    %14 = vector.load %arg3[%c4, %c0_11] : memref<8x32xf32, #tpu.memory_space<vmem>>, vector<1x32xf32>
    %15 = vector.shape_cast %14 : vector<1x32xf32> to vector<32xf32>
    %c5 = arith.constant 5 : index
    %c0_12 = arith.constant 0 : index
    %16 = vector.load %arg3[%c5, %c0_12] : memref<8x32xf32, #tpu.memory_space<vmem>>, vector<1x32xf32>
    %17 = vector.shape_cast %16 : vector<1x32xf32> to vector<32xf32>
    %c6 = arith.constant 6 : index
    %c0_13 = arith.constant 0 : index
    %18 = vector.load %arg3[%c6, %c0_13] : memref<8x32xf32, #tpu.memory_space<vmem>>, vector<1x32xf32>
    %19 = vector.shape_cast %18 : vector<1x32xf32> to vector<32xf32>
    %c7 = arith.constant 7 : index
    %c0_14 = arith.constant 0 : index
    %20 = vector.load %arg3[%c7, %c0_14] : memref<8x32xf32, #tpu.memory_space<vmem>>, vector<1x32xf32>
    %21 = vector.shape_cast %20 : vector<1x32xf32> to vector<32xf32>
    %cst = arith.constant dense<0.000000e+00> : vector<8xf32>
    %22 = vector.multi_reduction <add>, %1, %cst [1] : vector<8x32xf32> to vector<8xf32>
    %23 = vector.shape_cast %22 : vector<8xf32> to vector<8x1xf32>
    %cst_15 = arith.constant 3.200000e+01 : f32
    %24 = vector.broadcast %cst_15 : f32 to vector<8x1xf32>
    %25 = arith.divf %23, %24 : vector<8x1xf32>
    %26 = vector.broadcast %25 : vector<8x1xf32> to vector<8x32xf32>
    %27 = arith.subf %1, %26 : vector<8x32xf32>
    %28 = arith.mulf %27, %27 : vector<8x32xf32>
    %cst_16 = arith.constant dense<0.000000e+00> : vector<8xf32>
    %29 = vector.multi_reduction <add>, %28, %cst_16 [1] : vector<8x32xf32> to vector<8xf32>
    %30 = vector.shape_cast %29 : vector<8xf32> to vector<8x1xf32>
    %cst_17 = arith.constant 3.200000e+01 : f32
    %31 = vector.broadcast %cst_17 : f32 to vector<8x1xf32>
    %32 = arith.divf %30, %31 : vector<8x1xf32>
    %33 = vector.broadcast %25 : vector<8x1xf32> to vector<8x32xf32>
    %34 = arith.subf %1, %33 : vector<8x32xf32>
    %cst_18 = arith.constant 9.99999974E-6 : f32
    %35 = vector.broadcast %cst_18 : f32 to vector<8x1xf32>
    %36 = arith.addf %32, %35 : vector<8x1xf32>
    %37 = math.rsqrt %36 : vector<8x1xf32>
    %38 = vector.broadcast %37 : vector<8x1xf32> to vector<8x32xf32>
    %39 = arith.mulf %34, %38 : vector<8x32xf32>
    %40 = vector.shape_cast %3 : vector<32xf32> to vector<1x32xf32>
    %41 = vector.broadcast %40 : vector<1x32xf32> to vector<8x32xf32>
    %42 = arith.mulf %39, %41 : vector<8x32xf32>
    %43 = vector.shape_cast %5 : vector<32xf32> to vector<1x32xf32>
    %44 = vector.broadcast %43 : vector<1x32xf32> to vector<8x32xf32>
    %45 = arith.addf %42, %44 : vector<8x32xf32>
    %46 = arith.truncf %45 : vector<8x32xf32> to vector<8x32xbf16>
    %c0_19 = arith.constant 0 : index
    %c0_20 = arith.constant 0 : index
    %47 = vector.load %arg7[%c0_19, %c0_20] : memref<32x64xbf16, #tpu.memory_space<vmem>>, vector<32x64xbf16>
    %cst_21 = arith.constant dense<0.000000e+00> : vector<8x64xf32>
    %48 = tpu.matmul %46, %47, %cst_21 {dimension_numbers = #tpu.dot_dimension_numbers<[1], [0], [0], [1], [0, 0, 1, 1], [], []>} : vector<8x32xbf16>, vector<32x64xbf16>, vector<8x64xf32> -> vector<8x64xf32>
    %c0_22 = arith.constant 0 : index
    %c0_23 = arith.constant 0 : index
    %49 = vector.load %arg4[%c0_22, %c0_23] : memref<1x64xf32, #tpu.memory_space<vmem>>, vector<1x64xf32>
    %50 = vector.shape_cast %49 : vector<1x64xf32> to vector<64xf32>
    %51 = vector.shape_cast %50 : vector<64xf32> to vector<1x64xf32>
    %52 = vector.broadcast %51 : vector<1x64xf32> to vector<8x64xf32>
    %53 = arith.addf %48, %52 : vector<8x64xf32>
    %cst_24 = arith.constant 0.000000e+00 : f32
    %54 = vector.broadcast %cst_24 : f32 to vector<8x64xf32>
    %55 = arith.maximumf %53, %54 : vector<8x64xf32>
    %56 = arith.truncf %55 : vector<8x64xf32> to vector<8x64xbf16>
    %c0_25 = arith.constant 0 : index
    %c0_26 = arith.constant 0 : index
    %57 = vector.load %arg8[%c0_25, %c0_26] : memref<64x32xbf16, #tpu.memory_space<vmem>>, vector<64x32xbf16>
    %cst_27 = arith.constant dense<0.000000e+00> : vector<8x32xf32>
    %58 = tpu.matmul %56, %57, %cst_27 {dimension_numbers = #tpu.dot_dimension_numbers<[1], [0], [0], [1], [0, 0, 1, 1], [], []>} : vector<8x64xbf16>, vector<64x32xbf16>, vector<8x32xf32> -> vector<8x32xf32>
    %59 = vector.shape_cast %7 : vector<32xf32> to vector<1x32xf32>
    %60 = vector.broadcast %59 : vector<1x32xf32> to vector<8x32xf32>
    %61 = arith.addf %58, %60 : vector<8x32xf32>
    %cst_28 = arith.constant -1.000000e+02 : f32
    %cst_29 = arith.constant 1.000000e+02 : f32
    %62 = vector.broadcast %cst_28 : f32 to vector<8x32xf32>
    %63 = arith.maximumf %62, %61 : vector<8x32xf32>
    %64 = vector.broadcast %cst_29 : f32 to vector<8x32xf32>
    %65 = arith.minimumf %64, %63 : vector<8x32xf32>
    %66 = arith.truncf %65 : vector<8x32xf32> to vector<8x32xbf16>
    %c0_30 = arith.constant 0 : index
    %c0_31 = arith.constant 0 : index
    %67 = vector.load %arg9[%c0_30, %c0_31] : memref<32x96xbf16, #tpu.memory_space<vmem>>, vector<32x96xbf16>
    %cst_32 = arith.constant dense<0.000000e+00> : vector<8x96xf32>
    %68 = tpu.matmul %66, %67, %cst_32 {dimension_numbers = #tpu.dot_dimension_numbers<[1], [0], [0], [1], [0, 0, 1, 1], [], []>} : vector<8x32xbf16>, vector<32x96xbf16>, vector<8x96xf32> -> vector<8x96xf32>
    %c0_33 = arith.constant 0 : index
    %c0_34 = arith.constant 0 : index
    %69 = vector.load %arg5[%c0_33, %c0_34] : memref<1x96xf32, #tpu.memory_space<vmem>>, vector<1x96xf32>
    %70 = vector.shape_cast %69 : vector<1x96xf32> to vector<96xf32>
    %71 = vector.shape_cast %70 : vector<96xf32> to vector<1x96xf32>
    %72 = vector.broadcast %71 : vector<1x96xf32> to vector<8x96xf32>
    %73 = arith.addf %68, %72 : vector<8x96xf32>
    %74 = vector.extract_strided_slice %73 {offsets = [0, 0], sizes = [8, 32], strides = [1, 1]} : vector<8x96xf32> to vector<8x32xf32>
    %75 = vector.shape_cast %74 : vector<8x32xf32> to vector<1x8x32xf32>
    %76 = arith.truncf %75 : vector<1x8x32xf32> to vector<1x8x32xbf16>
    %77 = vector.extract_strided_slice %73 {offsets = [0, 32], sizes = [8, 32], strides = [1, 1]} : vector<8x96xf32> to vector<8x32xf32>
    %78 = vector.shape_cast %77 : vector<8x32xf32> to vector<1x8x32xf32>
    %79 = arith.truncf %78 : vector<1x8x32xf32> to vector<1x8x32xbf16>
    %80 = vector.extract_strided_slice %73 {offsets = [0, 64], sizes = [8, 32], strides = [1, 1]} : vector<8x96xf32> to vector<8x32xf32>
    %81 = vector.shape_cast %80 : vector<8x32xf32> to vector<1x8x32xf32>
    %82 = arith.truncf %81 : vector<1x8x32xf32> to vector<1x8x32xbf16>
    "tpu.trace_start"() <{level = 10 : i32, message = "bqd,bkd->bqk"}> : () -> ()
    %cst_35 = arith.constant dense<0.000000e+00> : vector<1x8x8xf32>
    %83 = tpu.matmul %76, %79, %cst_35 {dimension_numbers = #tpu.dot_dimension_numbers<[2], [2], [1], [1], [0, 0, 0, 1, 1, 1], [0], [0]>} : vector<1x8x32xbf16>, vector<1x8x32xbf16>, vector<1x8x8xf32> -> vector<1x8x8xf32>
    "tpu.trace_stop"() : () -> ()
    %cst_36 = arith.constant dense<0xFF800000> : vector<1x8xf32>
    %84 = vector.multi_reduction <maximumf>, %83, %cst_36 [2] : vector<1x8x8xf32> to vector<1x8xf32>
    %85 = vector.shape_cast %84 : vector<1x8xf32> to vector<1x8x1xf32>
    %86 = vector.broadcast %85 : vector<1x8x1xf32> to vector<1x8x8xf32>
    %87 = arith.subf %83, %86 : vector<1x8x8xf32>
    %88 = math.exp %87 : vector<1x8x8xf32>
    %cst_37 = arith.constant dense<0.000000e+00> : vector<1x8xf32>
    %89 = vector.multi_reduction <add>, %88, %cst_37 [2] : vector<1x8x8xf32> to vector<1x8xf32>
    %90 = vector.shape_cast %89 : vector<1x8xf32> to vector<1x8x1xf32>
    %91 = tpu.reciprocal %90 {approx = true} : vector<1x8x1xf32> -> vector<1x8x1xf32>
    %92 = vector.broadcast %91 : vector<1x8x1xf32> to vector<1x8x8xf32>
    %93 = arith.mulf %88, %92 : vector<1x8x8xf32>
    %94 = arith.truncf %93 : vector<1x8x8xf32> to vector<1x8x8xbf16>
    "tpu.trace_start"() <{level = 10 : i32, message = "bqk,bkd->bqd"}> : () -> ()
    %cst_38 = arith.constant dense<0.000000e+00> : vector<1x8x32xf32>
    %95 = tpu.matmul %94, %82, %cst_38 {dimension_numbers = #tpu.dot_dimension_numbers<[2], [1], [1], [2], [0, 0, 0, 1, 1, 2], [0], [0]>} : vector<1x8x8xbf16>, vector<1x8x32xbf16>, vector<1x8x32xf32> -> vector<1x8x32xf32>
    "tpu.trace_stop"() : () -> ()
    %96 = vector.shape_cast %95 : vector<1x8x32xf32> to vector<8x32xf32>
    %97 = arith.addf %65, %96 : vector<8x32xf32>
    %cst_39 = arith.constant dense<0.000000e+00> : vector<8xf32>
    %98 = vector.multi_reduction <add>, %97, %cst_39 [1] : vector<8x32xf32> to vector<8xf32>
    %99 = vector.shape_cast %98 : vector<8xf32> to vector<8x1xf32>
    %cst_40 = arith.constant 3.200000e+01 : f32
    %100 = vector.broadcast %cst_40 : f32 to vector<8x1xf32>
    %101 = arith.divf %99, %100 : vector<8x1xf32>
    %102 = vector.broadcast %101 : vector<8x1xf32> to vector<8x32xf32>
    %103 = arith.subf %97, %102 : vector<8x32xf32>
    %104 = arith.mulf %103, %103 : vector<8x32xf32>
    %cst_41 = arith.constant dense<0.000000e+00> : vector<8xf32>
    %105 = vector.multi_reduction <add>, %104, %cst_41 [1] : vector<8x32xf32> to vector<8xf32>
    %106 = vector.shape_cast %105 : vector<8xf32> to vector<8x1xf32>
    %cst_42 = arith.constant 3.200000e+01 : f32
    %107 = vector.broadcast %cst_42 : f32 to vector<8x1xf32>
    %108 = arith.divf %106, %107 : vector<8x1xf32>
    %109 = vector.broadcast %101 : vector<8x1xf32> to vector<8x32xf32>
    %110 = arith.subf %97, %109 : vector<8x32xf32>
    %cst_43 = arith.constant 9.99999974E-6 : f32
    %111 = vector.broadcast %cst_43 : f32 to vector<8x1xf32>
    %112 = arith.addf %108, %111 : vector<8x1xf32>
    %113 = math.rsqrt %112 : vector<8x1xf32>
    %114 = vector.broadcast %113 : vector<8x1xf32> to vector<8x32xf32>
    %115 = arith.mulf %110, %114 : vector<8x32xf32>
    %116 = vector.shape_cast %9 : vector<32xf32> to vector<1x32xf32>
    %117 = vector.broadcast %116 : vector<1x32xf32> to vector<8x32xf32>
    %118 = arith.mulf %115, %117 : vector<8x32xf32>
    %119 = vector.shape_cast %11 : vector<32xf32> to vector<1x32xf32>
    %120 = vector.broadcast %119 : vector<1x32xf32> to vector<8x32xf32>
    %121 = arith.addf %118, %120 : vector<8x32xf32>
    %122 = arith.truncf %121 : vector<8x32xf32> to vector<8x32xbf16>
    %c0_44 = arith.constant 0 : index
    %c0_45 = arith.constant 0 : index
    %123 = vector.load %arg10[%c0_44, %c0_45] : memref<32x128xbf16, #tpu.memory_space<vmem>>, vector<32x128xbf16>
    %cst_46 = arith.constant dense<0.000000e+00> : vector<8x128xf32>
    %124 = tpu.matmul %122, %123, %cst_46 {dimension_numbers = #tpu.dot_dimension_numbers<[1], [0], [0], [1], [0, 0, 1, 1], [], []>} : vector<8x32xbf16>, vector<32x128xbf16>, vector<8x128xf32> -> vector<8x128xf32>
    %c0_47 = arith.constant 0 : index
    %c0_48 = arith.constant 0 : index
    %125 = vector.load %arg6[%c0_47, %c0_48] : memref<1x128xf32, #tpu.memory_space<vmem>>, vector<1x128xf32>
    %126 = vector.shape_cast %125 : vector<1x128xf32> to vector<128xf32>
    %127 = vector.shape_cast %126 : vector<128xf32> to vector<1x128xf32>
    %128 = vector.broadcast %127 : vector<1x128xf32> to vector<8x128xf32>
    %129 = arith.addf %124, %128 : vector<8x128xf32>
    %cst_49 = arith.constant 0.000000e+00 : f32
    %130 = vector.broadcast %cst_49 : f32 to vector<8x128xf32>
    %131 = arith.maximumf %129, %130 : vector<8x128xf32>
    %132 = arith.truncf %131 : vector<8x128xf32> to vector<8x128xbf16>
    %c0_50 = arith.constant 0 : index
    %c0_51 = arith.constant 0 : index
    %133 = vector.load %arg11[%c0_50, %c0_51] : memref<128x32xbf16, #tpu.memory_space<vmem>>, vector<128x32xbf16>
    %cst_52 = arith.constant dense<0.000000e+00> : vector<8x32xf32>
    %134 = tpu.matmul %132, %133, %cst_52 {dimension_numbers = #tpu.dot_dimension_numbers<[1], [0], [0], [1], [0, 0, 1, 1], [], []>} : vector<8x128xbf16>, vector<128x32xbf16>, vector<8x32xf32> -> vector<8x32xf32>
    %135 = vector.shape_cast %13 : vector<32xf32> to vector<1x32xf32>
    %136 = vector.broadcast %135 : vector<1x32xf32> to vector<8x32xf32>
    %137 = arith.addf %134, %136 : vector<8x32xf32>
    %138 = arith.addf %121, %137 : vector<8x32xf32>
    %cst_53 = arith.constant dense<0.000000e+00> : vector<8xf32>
    %139 = vector.multi_reduction <add>, %138, %cst_53 [1] : vector<8x32xf32> to vector<8xf32>
    %140 = vector.shape_cast %139 : vector<8xf32> to vector<8x1xf32>
    %cst_54 = arith.constant 3.200000e+01 : f32
    %141 = vector.broadcast %cst_54 : f32 to vector<8x1xf32>
    %142 = arith.divf %140, %141 : vector<8x1xf32>
    %143 = vector.broadcast %142 : vector<8x1xf32> to vector<8x32xf32>
    %144 = arith.subf %138, %143 : vector<8x32xf32>
    %145 = arith.mulf %144, %144 : vector<8x32xf32>
    %cst_55 = arith.constant dense<0.000000e+00> : vector<8xf32>
    %146 = vector.multi_reduction <add>, %145, %cst_55 [1] : vector<8x32xf32> to vector<8xf32>
    %147 = vector.shape_cast %146 : vector<8xf32> to vector<8x1xf32>
    %cst_56 = arith.constant 3.200000e+01 : f32
    %148 = vector.broadcast %cst_56 : f32 to vector<8x1xf32>
    %149 = arith.divf %147, %148 : vector<8x1xf32>
    %150 = vector.broadcast %142 : vector<8x1xf32> to vector<8x32xf32>
    %151 = arith.subf %138, %150 : vector<8x32xf32>
    %cst_57 = arith.constant 9.99999974E-6 : f32
    %152 = vector.broadcast %cst_57 : f32 to vector<8x1xf32>
    %153 = arith.addf %149, %152 : vector<8x1xf32>
    %154 = math.rsqrt %153 : vector<8x1xf32>
    %155 = vector.broadcast %154 : vector<8x1xf32> to vector<8x32xf32>
    %156 = arith.mulf %151, %155 : vector<8x32xf32>
    %157 = vector.shape_cast %15 : vector<32xf32> to vector<1x32xf32>
    %158 = vector.broadcast %157 : vector<1x32xf32> to vector<8x32xf32>
    %159 = arith.mulf %156, %158 : vector<8x32xf32>
    %160 = vector.shape_cast %17 : vector<32xf32> to vector<1x32xf32>
    %161 = vector.broadcast %160 : vector<1x32xf32> to vector<8x32xf32>
    %162 = arith.addf %159, %161 : vector<8x32xf32>
    %cst_58 = arith.constant dense<0.000000e+00> : vector<8xf32>
    %163 = vector.multi_reduction <add>, %162, %cst_58 [1] : vector<8x32xf32> to vector<8xf32>
    %164 = vector.shape_cast %163 : vector<8xf32> to vector<8x1xf32>
    %cst_59 = arith.constant 3.200000e+01 : f32
    %165 = vector.broadcast %cst_59 : f32 to vector<8x1xf32>
    %166 = arith.divf %164, %165 : vector<8x1xf32>
    %167 = vector.broadcast %166 : vector<8x1xf32> to vector<8x32xf32>
    %168 = arith.subf %162, %167 : vector<8x32xf32>
    %169 = arith.mulf %168, %168 : vector<8x32xf32>
    %cst_60 = arith.constant dense<0.000000e+00> : vector<8xf32>
    %170 = vector.multi_reduction <add>, %169, %cst_60 [1] : vector<8x32xf32> to vector<8xf32>
    %171 = vector.shape_cast %170 : vector<8xf32> to vector<8x1xf32>
    %cst_61 = arith.constant 3.200000e+01 : f32
    %172 = vector.broadcast %cst_61 : f32 to vector<8x1xf32>
    %173 = arith.divf %171, %172 : vector<8x1xf32>
    %174 = vector.broadcast %166 : vector<8x1xf32> to vector<8x32xf32>
    %175 = arith.subf %162, %174 : vector<8x32xf32>
    %cst_62 = arith.constant 9.99999974E-6 : f32
    %176 = vector.broadcast %cst_62 : f32 to vector<8x1xf32>
    %177 = arith.addf %173, %176 : vector<8x1xf32>
    %178 = math.rsqrt %177 : vector<8x1xf32>
    %179 = vector.broadcast %178 : vector<8x1xf32> to vector<8x32xf32>
    %180 = arith.mulf %175, %179 : vector<8x32xf32>
    %181 = vector.shape_cast %19 : vector<32xf32> to vector<1x32xf32>
    %182 = vector.broadcast %181 : vector<1x32xf32> to vector<8x32xf32>
    %183 = arith.mulf %180, %182 : vector<8x32xf32>
    %184 = vector.shape_cast %21 : vector<32xf32> to vector<1x32xf32>
    %185 = vector.broadcast %184 : vector<1x32xf32> to vector<8x32xf32>
    %186 = arith.addf %183, %185 : vector<8x32xf32>
    %187 = vector.shape_cast %186 : vector<8x32xf32> to vector<1x8x32xf32>
    %c0_63 = arith.constant 0 : index
    %c0_64 = arith.constant 0 : index
    %c0_65 = arith.constant 0 : index
    %188 = vector.load %arg12[%c0_63, %c0_64, %c0_65] : memref<1x8x32xf32, #tpu.memory_space<vmem>>, vector<1x8x32xf32>
    tpu.vector_store %arg12[%c0_63, %c0_64, %c0_65], %187 {strides = array<i32>} : memref<1x8x32xf32, #tpu.memory_space<vmem>>, vector<1x8x32xf32>,
    return
  }
  func.func @transform_0(%arg0: i32) -> (i32, i32, i32) {
    %c0_i32 = arith.constant 0 : i32
    %c0_i32_0 = arith.constant 0 : i32
    %c0_i32_1 = arith.constant 0 : i32
    return %arg0, %c0_i32, %c0_i32_0 : i32, i32, i32
  }
  func.func @transform_1(%arg0: i32) -> (i32, i32) {
    %c0_i32 = arith.constant 0 : i32
    %c0_i32_0 = arith.constant 0 : i32
    %c0_i32_1 = arith.constant 0 : i32
    return %c0_i32, %c0_i32_0 : i32, i32
  }
  func.func @transform_2(%arg0: i32) -> (i32, i32) {
    %c0_i32 = arith.constant 0 : i32
    %c0_i32_0 = arith.constant 0 : i32
    %c0_i32_1 = arith.constant 0 : i32
    return %c0_i32, %c0_i32_0 : i32, i32
  }
  func.func @transform_3(%arg0: i32) -> (i32, i32) {
    %c0_i32 = arith.constant 0 : i32
    %c0_i32_0 = arith.constant 0 : i32
    %c0_i32_1 = arith.constant 0 : i32
    return %c0_i32, %c0_i32_0 : i32, i32
  }
  func.func @transform_4(%arg0: i32) -> (i32, i32) {
    %c0_i32 = arith.constant 0 : i32
    %c0_i32_0 = arith.constant 0 : i32
    %c0_i32_1 = arith.constant 0 : i32
    return %c0_i32, %c0_i32_0 : i32, i32
  }
  func.func @transform_5(%arg0: i32) -> (i32, i32) {
    %c0_i32 = arith.constant 0 : i32
    %c0_i32_0 = arith.constant 0 : i32
    %c0_i32_1 = arith.constant 0 : i32
    return %c0_i32, %c0_i32_0 : i32, i32
  }
  func.func @transform_6(%arg0: i32) -> (i32, i32) {
    %c0_i32 = arith.constant 0 : i32
    %c0_i32_0 = arith.constant 0 : i32
    %c0_i32_1 = arith.constant 0 : i32
    return %c0_i32, %c0_i32_0 : i32, i32
  }
  func.func @transform_7(%arg0: i32) -> (i32, i32) {
    %c0_i32 = arith.constant 0 : i32
    %c0_i32_0 = arith.constant 0 : i32
    %c0_i32_1 = arith.constant 0 : i32
    return %c0_i32, %c0_i32_0 : i32, i32
  }
  func.func @transform_8(%arg0: i32) -> (i32, i32) {
    %c0_i32 = arith.constant 0 : i32
    %c0_i32_0 = arith.constant 0 : i32
    %c0_i32_1 = arith.constant 0 : i32
    return %c0_i32, %c0_i32_0 : i32, i32
  }
  func.func @transform_9(%arg0: i32) -> (i32, i32) {
    %c0_i32 = arith.constant 0 : i32
    %c0_i32_0 = arith.constant 0 : i32
    %c0_i32_1 = arith.constant 0 : i32
    return %c0_i32, %c0_i32_0 : i32, i32
  }
  func.func @transform_10(%arg0: i32) -> (i32, i32) {
    %c0_i32 = arith.constant 0 : i32
    %c0_i32_0 = arith.constant 0 : i32
    %c0_i32_1 = arith.constant 0 : i32
    return %c0_i32, %c0_i32_0 : i32, i32
  }
  func.func @transform_11(%arg0: i32) -> (i32, i32, i32) {
    %c0_i32 = arith.constant 0 : i32
    %c0_i32_0 = arith.constant 0 : i32
    %c0_i32_1 = arith.constant 0 : i32
    return %arg0, %c0_i32, %c0_i32_0 : i32, i32, i32
  }
}

</mosaic_0001>

<bundles_post_ra>
// kernel: tpu_custom_call.1
= control target key start
LH: loop header
LB: loop body
LE: loop exit
PB: predicated region body
PF: predicated region fallthrough
CT: control target
= control target key end

     0   :  { %s1660_s0 = inlined_call_operand.vmem [shape: f32[2,8,32], index: 0, kind: input, shape index: {}]   ;;  %s1661_s1 = inlined_call_operand.vmem [shape: f32[2,32], index: 1, kind: input, shape index: {}]   ;;  %s1662_s2 = inlined_call_operand.vmem [shape: f32[8,32], index: 2, kind: input, shape index: {}]   ;;  %s1663_s3 = inlined_call_operand.vmem [shape: f32[1,64], index: 3, kind: input, shape index: {}]   ;;  %s1664_s4 = inlined_call_operand.vmem [shape: f32[1,96], index: 4, kind: input, shape index: {}]   ;;  %s1665_s5 = inlined_call_operand.vmem [shape: f32[1,128], index: 5, kind: input, shape index: {}]   ;;  %s1666_s6 = inlined_call_operand.vmem [shape: bf16[32,64], index: 6, kind: input, shape index: {}]   ;;  %s1667_s7 = inlined_call_operand.vmem [shape: bf16[64,32], index: 7, kind: input, shape index: {}]   ;;  %s1668_s8 = inlined_call_operand.vmem [shape: bf16[32,96], index: 8, kind: input, shape index: {}]   ;;  %s1669_s9 = inlined_call_operand.vmem [shape: bf16[32,128], index: 9, kind: input, shape index: {}]   ;;  %s1670_s10 = inlined_call_operand.vmem [shape: bf16[128,32], index: 10, kind: input, shape index: {}]   ;;  %s1671_s11 = inlined_call_operand.hbm [shape: f32[2,8,32], index: 11, kind: output, shape index: {}]  }
   0x1   :  { %1672 = sst [smem:[#allocation5_spill]] %s1660_s0 }
   0x2   :  { %1673 = sst [smem:[#allocation6_spill]] %s1661_s1 }
   0x3   :  { %16 = vsyncpa [#allocation3], 0 }
   0x4   :  { %18 = vsyncpa [#allocation3 + $0x1], 0  ;;  %s1416_s17 = smov 0   ;;  %s1418_s18 = smov 0  }
   0x5   :  { %s1420_s19 = smov 0   ;;  %s1422_s20 = smov 0  }
   0x6 LB: > { %s1437_s21 = sadd.s32 4294967295, %s1349_s20   ;;  %s1071_s22 = sadd.s32 4294967294, %s1349_s20   ;;  %s1349_s20 = sphi %s1422_s20, %s1681_s20   ;;  %s1345_s19 = sphi %s1420_s19, %s1680_s19   ;;  %s1341_s18 = sphi %s1418_s18, %s1679_s18   ;;  %s1337_s17 = sphi %s1416_s17, %s1678_s17  }
   0x7   : > { %s1441_s23 = sadd.s32 1, %s1349_s20   ;;  %s267_s24 = sadd.s32 1, %s1345_s19 }
   0x8   : > { %s264_s25 = ssub.s32 %s1349_s20, %s1441_s23  ;;  %p277_p0 = scmp.ne.s32.totalorder %s1345_s19, %s1341_s18 }
   0x9   : > { %p265_p1 = scmp.eq.s32.totalorder %s264_s25, 0  ;;  %p278_p2 = scmp.eq.s32.totalorder %s1437_s21, 1 }
   0xa   : > { %p283_p3 = scmp.ne.s32.totalorder %s1341_s18, %s1337_s17  ;;  %p284_p4 = scmp.eq.s32.totalorder %s1071_s22, 1 }
   0xb   : > { %s1452_s26 = scalar_select %p265_p1, %s1345_s19, %s267_s24  }
   0xc   : > { %p1454_p5 = por %p278_p2, %p277_p0  ;;  %p1458_p6 = por %p284_p4, %p283_p3 }
   0xd   : > { %p1074_p7 = scmp.ge.s32.totalorder %s1349_s20, 1  ;;  %p339_p8 = scmp.lt.s32.totalorder %s1349_s20, 3 }
   0xf   : > { %p340_p9 = pnand %p1074_p7, %p339_p8 }
  0x10   : > { %p378_p10 = scmp.lt.s32.totalorder (!%p340_p9), %s1437_s21, 1  ;;  %vm394_vm0 = vcmask (!%p340_p9), 261120   ;;  %s1676_s0 = sld [smem:[#allocation5_spill]] (!%p340_p9)  ;;  %v1257_v7 = vld [vmem:[%s1666_s6] sm:$0xff] (!%p340_p9)   ;;  %v1351_v8 = vmov (!%p340_p9), 0.0   ;;  %vm1352_vm1 = vmmov (!%p340_p9), 0  }
  0x11   : > { %343 = sbr.rel (%p340_p9) target bundleno = 3250 (0xcb2), region = 64  ;;  %1146 = vmatprep.subr.bf16.mxu0 (!%p340_p9), %v1351_v8  ;;  %1150 = vmatprep.mubr.msk.bf16.mxu0 (!%p340_p9), %vm1352_vm1, %v1351_v8  ;;  %v1258_v9 = vld [vmem:[%s1666_s6 + $0x8] sm:$0xff] (!%p340_p9)   ;;  %s1677_s1 = sld [smem:[#allocation6_spill]] (!%p340_p9)  ;;  %v1259_v19 = vld [vmem:[%s1667_s7] sm:$0xff] (!%p340_p9)   ;;  %v1261_v22 = vld [vmem:[%s1667_s7 + $0x10] sm:$0xff] (!%p340_p9)   ;;  %vm524_vm2 = vcmask (!%p340_p9), 523264  }
  0x12   : > { %1147 = vmatpush3.bf16.msra.mxu0 (!%p340_p9), %v1257_v7  ;;  %1180 = vmatprep.subr.bf16.mxu1 (!%p340_p9), %v1351_v8  ;;  %v1260_v21 = vld [vmem:[%s1667_s7 + $0x8] sm:$0xff] (!%p340_p9)   ;;  %v1262_v23 = vld [vmem:[%s1667_s7 + $0x18] sm:$0xff] (!%p340_p9)   ;;  %v1079_v24 = vld [vmem:[%s1663_s3] ss:$0 sm:$0xff] (!%p340_p9)  ;;  %vm687_vm3 = vcmask (!%p340_p9), 64512   ;;  %s1354_s12 = smov (!%p340_p9), 64  }
  0x13   : > { %1148 = vmatprep.subr.bf16.mxu0 (!%p340_p9), %v1351_v8  ;;  %1182 = vmatprep.mubr.msk.bf16.mxu1 (!%p340_p9), %vm1352_vm1, %v1351_v8  ;;  %v1263_v32 = vld [vmem:[%s1668_s8] sm:$0xff] (!%p340_p9)   ;;  %v1264_v33 = vld [vmem:[%s1668_s8 + $0x8] sm:$0xff] (!%p340_p9)   ;;  %vm705_vm4 = vcmask (!%p340_p9), 1043456   ;;  %s375_s15 = sand.u32 (!%p340_p9), 1, %s1341_s18  }
  0x14   : > { %v1083_v34 = vld [vmem:[%s1662_s2] ss:$0 sm:$0xff] (!%p340_p9)  ;;  %s1075_s16 = sshll.u32 (!%p340_p9), %s375_s15, 3  ;;  %s999_s22 = scalar_lea.sflag (!%p340_p9), [#allocation3], %s375_s15 }
  0x15   : > { %v1090_v42 = vld [vmem:[%s1664_s4] ss:$0 sm:$0xff] (!%p340_p9) }
  0x16   : > { %1149 = vmatpush3.bf16.msra.mxu0 (!%p340_p9), %v1258_v9 }
  0x17   : > { %1154 = vmatprep.subr.bf16.mxu0 (!%p340_p9), %v1351_v8  ;;  %v1077_v14 = vld [vmem:[%s1677_s1] ss:$0 sm:$0xff] (!%p340_p9)  ;;  %v1078_v16 = vld [vmem:[%s1677_s1 + $0x1] ss:$0 sm:$0xff] (!%p340_p9) }
  0x18   : > { %s379_s29 = scalar_select %p378_p10, %s1437_s21, 1 }
  0x1a   : > { %s1076_s30 = sshll.u32 %s379_s29, 3 }
  0x1b   : > { %s381_s14 = scalar_lea.vmem %s1676_s0, %s1076_s30  ;;  %s1353_s30 = smov 96  }
  0x1c   : > { %v383_v0 = vld [vmem:[%s381_s14] sm:$0xff] }
  0x1d   : > { %v395_v1 = vsel %vm394_vm0, %v383_v0, 0.0 }
  0x1e   : > { %396 = vadd.xlane.f32.xlu0 %v395_v1 }
  0xab   : > { %v397_v2 = vpop.xlane.xlu0 %396 }
  0xac   : > { %v399_v3 = vmul.f32 0.03125, %v397_v2 }
  0xae   : > { %v400_v4 = vsub.f32 %v383_v0, %v399_v3 }
  0xb0   : > { %v401_v5 = vmul.f32 %v400_v4, %v400_v4 }
  0xb2   : > { %v402_v6 = vsel %vm394_vm0, %v401_v5, 0.0 }
  0xb3   : > { %403 = vadd.xlane.f32.xlu0 %v402_v6 }
 0x140   : > { %v404_v10 = vpop.xlane.xlu0 %403 }
 0x141   : > { %v405_v11 = vmul.f32 0.03125, %v404_v10 }
 0x143   : > { %v406_v12 = vadd.f32 1e-05, %v405_v11 }
 0x145   : > { %1275 = vrsqrt.f32 %v406_v12 }
 0x14f   : > { %v1276_v13 = vpop.eup %1275 }
 0x150   : > { %v408_v15 = vmul.f32 %v1276_v13, %v400_v4 }
 0x152   : > { %v413_v17 = vmul.f32 %v1077_v14, %v408_v15  ;;  %v1265_v15 = vld [vmem:[%s1669_s9] sm:$0xff]  }
 0x154   : > { %v418_v18 = vadd.f32 %v1078_v16, %v413_v17  ;;  %v1266_v16 = vld [vmem:[%s1669_s9 + $0x8] sm:$0xff]  }
 0x156   : > { %v419_v20 = vpack.c.bf16 %v418_v18, %v418_v18 }
 0x158   : > { %1151 = vmatmul.mubr.msk.bf16.vlgmr.msra.gmra.mrb[0].mxu0 %vm394_vm0, %v419_v20 }
 0x159   : > { %1155 = vmatpush3.bf16.msra.mxu0 %v1259_v19  ;;  %1162 = vmatprep.mubr.msk.bf16.mxu0 %vm1352_vm1, %v1351_v8 }
 0x15a   : > { %1156 = vmatprep.subr.bf16.mxu0 %v1351_v8 }
 0x15d   : > { %1157 = vmatpush3.bf16.msra.mxu0 %v1260_v21  ;;  %v1096_v21 = vld [vmem:[%s1662_s2 + $0x1] ss:$0 sm:$0xff] }
 0x15e   : > { %1158 = vmatprep.subr.bf16.mxu0 %v1351_v8 }
 0x161   : > { %1159 = vmatpush3.bf16.msra.mxu0 %v1261_v22 }
 0x162   : > { %1160 = vmatprep.subr.bf16.mxu0 %v1351_v8 }
 0x165   : > { %1161 = vmatpush3.bf16.msra.mxu0 %v1262_v23  ;;  %v1097_v23 = vld [vmem:[%s1662_s2 + $0x2] ss:$0 sm:$0xff] }
 0x166   : > { %1166 = vmatprep.subr.bf16.mxu0 %v1351_v8 }
 0x22b   : > { %v480_v25 = vpop.f32.mrb[0].mxu0 }
 0x22c   : > { %v481_v26 = vadd.f32 %v1079_v24, %v480_v25  ;;  %v1152_v27 = vpop.f32.mrb[1].mxu0 }
 0x22d   : > { %v483_v28 = vpop.f32.mrb[2].mxu0 }
 0x22e   : > { %v486_v29 = vmax.f32 %v481_v26, 0.0  ;;  %v1153_v30 = vpop.f32.mrb[3].mxu0  ;;  %v1267_v26 = vld [vmem:[%s1670_s10] sm:$0xff]   ;;  %v1268_v28 = vld [vmem:[%s1670_s10 + $0x8] sm:$0xff]  }
 0x22f   : > { %v1270_v30 = vld [vmem:[%s1670_s10 + $0x18] sm:$0xff]  }
 0x230   : > { %v487_v31 = vpack.c.bf16 %v486_v29, %v486_v29  ;;  %v1269_v29 = vld [vmem:[%s1670_s10 + $0x10] sm:$0xff]  }
 0x232   : > { %1163 = vmatmul.mubr.msk.bf16.vlgmr.msra.gmra.mrb[4].mxu0 %vm524_vm2, %v487_v31  ;;  %v1271_v31 = vld [vmem:[%s1670_s10 + $0x20] sm:$0xff]  }
 0x233   : > { %1170 = vmatprep.mubr.msk.bf16.mxu0 %vm1352_vm1, %v1351_v8  ;;  %1167 = vmatpush3.bf16.msra.mxu0 %v1263_v32  ;;  %v1272_v32 = vld [vmem:[%s1670_s10 + $0x28] sm:$0xff]  }
 0x234   : > { %1168 = vmatprep.subr.bf16.mxu0 %v1351_v8 }
 0x237   : > { %1169 = vmatpush3.bf16.msra.mxu0 %v1264_v33  ;;  %v1273_v33 = vld [vmem:[%s1670_s10 + $0x30] sm:$0xff]  }
 0x238   : > { %1174 = vmatprep.subr.bf16.mxu0 %v1351_v8 }
 0x305   : > { %v562_v35 = vpop.f32.mrb[4].mxu0 }
 0x306   : > { %v563_v36 = vadd.f32 %v1083_v34, %v562_v35  ;;  %v1164_v37 = vpop.f32.mrb[5].mxu0  ;;  %v1274_v34 = vld [vmem:[%s1670_s10 + $0x38] sm:$0xff]   ;;  %v1098_v35 = vld [vmem:[%s1665_s5] ss:$0 sm:$0xff] }
 0x307   : > { %v565_v38 = vpop.f32.mrb[6].mxu0 }
 0x308   : > { %v1089_v39 = vclamps-f32 %v563_v36, 100.0  ;;  %v1165_v40 = vpop.f32.mrb[7].mxu0 }
 0x30a   : > { %v570_v41 = vpack.c.bf16 %v1089_v39, %v1089_v39 }
 0x30c   : > { %1171 = vmatmul.mubr.msk.bf16.vlgmr.msra.gmra.mrb[8].mxu0 %vm394_vm0, %v570_v41 }
 0x30d   : > { %1176 = vmatprep.mubr.msk.bf16.mxu0 %vm1352_vm1, %v1351_v8 }
 0x3df   : > { %v631_v43 = vpop.f32.mrb[8].mxu0 }
 0x3e0   : > { %v632_v44 = vadd.f32 %v1090_v42, %v631_v43  ;;  %v1172_v45 = vpop.f32.mrb[9].mxu0 }
 0x3e1   : > { %v634_v46 = vpop.f32.mrb[10].mxu0 }
 0x3e2   : > { %v637_v47 = vpack.c.bf16 %v632_v44, %v632_v44  ;;  %v1173_v48 = vpop.f32.mrb[11].mxu0 }
 0x3e4   : > { %639 = vrot.lane.b32.xlu1 %v637_v47, %s1353_s30  ;;  %s1116_s30 = sshll.u32 %s1437_s21, 7  ;;  %s1355_s21 = smov [#allocation2]  }
 0x3e5   : > { %s1617_s1 = scalar_lea.hbm %s1671_s11, %s1116_s30 }
 0x456   : > { %v640_v49 = vpop.permute.xlu1 %639 }
 0x457   : > { %v645_v50 = vsel %vm394_vm0, %v640_v49, 0 }
 0x458   : > { %1175 = vmatpush3.bf16.xpose.msra.mxu0 %v645_v50 }
 0x45f   : > { %1177 = vmatmul.mubr.msk.bf16.vlgmr.msra.gmra.mrb[12].mxu0 %vm394_vm0, %v637_v47 }
 0x532   : > { %v681_v51 = vpop.f32.mrb[12].mxu0 }
 0x533   : > { %v1178_v52 = vpop.f32.mrb[13].mxu0  ;;  %v688_v53 = vsel %vm687_vm3, %v681_v51, -inf }
 0x534   : > { %689 = vmax.xlane.f32.xlu1 %v688_v53  ;;  %v684_v54 = vpop.f32.mrb[14].mxu0 }
 0x535   : > { %v1179_v55 = vpop.f32.mrb[15].mxu0 }
 0x5c1   : > { %v690_v56 = vpop.xlane.xlu1 %689 }
 0x5c2   : > { %v691_v57 = vsub.f32 %v681_v51, %v690_v56 }
 0x5c4   : > { %v692_v58 = vmul.f32 1.442695, %v691_v57 }
 0x5c6   : > { %1277 = vpow2.f32 %v692_v58 }
 0x5d0   : > { %v1278_v59 = vpop.eup %1277 }
 0x5d1   : > { %v694_v60 = vsel %vm687_vm3, %v1278_v59, 0.0 }
 0x5d2   : > { %695 = vadd.xlane.f32.xlu0 %v694_v60 }
 0x5e8   : > { %700 = vrot.lane.b32.xlu0 %v637_v47, %s1354_s12  ;;  %s377_s12 = scalar_lea.vmem [#allocation2], %s1075_s16  ;;  %s1291_s16 = sshll.u32 %s1355_s21, 4  ;;  %s1292_s16 = int_to_ptr.vmem [resolvable:$false] %s1291_s16 }
 0x5e9   : > { %s1012_s13 = sshll.u32 %s377_s12, 4  ;;  %s1293_s25 = scalar_lea.vmem %s1292_s16, 256  ;;  %s1619_s13 = int_to_ptr.vmem [resolvable:$true] %s1012_s13 }
 0x5ea   : > { %s1287_s24 = scalar_lea.vmem %s1619_s13, 128  ;;  %p1294_p0 = scmp.lt.s32.totalorder %s1619_s13, %s1292_s16 }
 0x5eb   : > { %p1288_p11 = scmp.ne.s32.totalorder %s1619_s13, %s1287_s24  ;;  %p1295_p1 = scmp.lt.s32.totalorder %s1293_s25, %s1287_s24 }
 0x5ed   : > { %p1289_p12 = pnand %p1288_p11, %p1454_p5  ;;  %p1296_p2 = por %p1295_p1, %p1294_p0 }
 0x5ef   : > { %p1290_p13 = pneg %p1289_p12 }
 0x5f1   : > { %p1297_p3 = pnand %p1296_p2, %p1290_p13 }
 0x65f   : > { %v696_v61 = vpop.xlane.xlu0 %695 }
 0x660   : > { %1279 = vrcp.f32 %v696_v61  ;;  %v1112_v61 = vld [vmem:[%s1662_s2 + $0x5] ss:$0 sm:$0xff] }
 0x663   : > { %v701_v62 = vpop.permute.xlu0 %700 }
 0x664   : > { %v707_v63 = vsel %vm705_vm4, %v701_v62, 0 }
 0x665   : > { %1181 = vmatpush3.bf16.msra.mxu1 %v707_v63 }
 0x666   : > { %1186 = vmatprep.subr.bf16.mxu1 %v1351_v8 }
 0x66a   : > { %v1280_v0 = vpop.eup %1279 }
 0x66b   : > { %v698_v1 = vmul.f32 %v1280_v0, %v1278_v59  ;;  %v1111_v59 = vld [vmem:[%s1662_s2 + $0x4] ss:$0 sm:$0xff] }
 0x66d   : > { %v699_v2 = vpack.c.bf16 %v698_v1, %v698_v1 }
 0x66f   : > { %1183 = vmatmul.mubr.msk.bf16.vlgmr.msra.gmra.mrb[0].mxu1 %vm687_vm3, %v699_v2 }
 0x670   : > { %1190 = vmatprep.mubr.msk.bf16.mxu1 %vm1352_vm1, %v1351_v8  ;;  %1187 = vmatpush3.bf16.msra.mxu1 %v1265_v15 }
 0x671   : > { %1188 = vmatprep.subr.bf16.mxu1 %v1351_v8 }
 0x674   : > { %1189 = vmatpush3.bf16.msra.mxu1 %v1266_v16 }
 0x675   : > { %1194 = vmatprep.subr.bf16.mxu1 %v1351_v8 }
 0x742   : > { %v743_v3 = vpop.f32.mrb[0].mxu1 }
 0x743   : > { %v749_v4 = vadd.f32 %v1089_v39, %v743_v3  ;;  %v1184_v5 = vpop.f32.mrb[1].mxu1 }
 0x744   : > { %v746_v6 = vpop.f32.mrb[2].mxu1 }
 0x745   : > { %v1185_v7 = vpop.f32.mrb[3].mxu1  ;;  %v750_v9 = vsel %vm394_vm0, %v749_v4, 0.0 }
 0x746   : > { %751 = vadd.xlane.f32.xlu0 %v750_v9 }
 0x7d3   : > { %v752_v10 = vpop.xlane.xlu0 %751 }
 0x7d4   : > { %v753_v11 = vmul.f32 0.03125, %v752_v10 }
 0x7d6   : > { %v754_v12 = vsub.f32 %v749_v4, %v753_v11  ;;  %v1113_v11 = vld [vmem:[%s1662_s2 + $0x6] ss:$0 sm:$0xff] }
 0x7d8   : > { %v755_v13 = vmul.f32 %v754_v12, %v754_v12 }
 0x7da   : > { %v756_v14 = vsel %vm394_vm0, %v755_v13, 0.0  ;;  %v1114_v13 = vld [vmem:[%s1662_s2 + $0x7] ss:$0 sm:$0xff] }
 0x7db   : > { %757 = vadd.xlane.f32.xlu1 %v756_v14 }
 0x868   : > { %v758_v17 = vpop.xlane.xlu1 %757 }
 0x869   : > { %v759_v18 = vmul.f32 0.03125, %v758_v17 }
 0x86b   : > { %v760_v19 = vadd.f32 1e-05, %v759_v18 }
 0x86d   : > { %1281 = vrsqrt.f32 %v760_v19 }
 0x877   : > { %v1282_v20 = vpop.eup %1281 }
 0x878   : > { %v762_v22 = vmul.f32 %v1282_v20, %v754_v12 }
 0x87a   : > { %v767_v24 = vmul.f32 %v1096_v21, %v762_v22 }
 0x87c   : > { %v772_v25 = vadd.f32 %v1097_v23, %v767_v24 }
 0x87e   : > { %v773_v27 = vpack.c.bf16 %v772_v25, %v772_v25 }
 0x880   : > { %1191 = vmatmul.mubr.msk.bf16.vlgmr.msra.gmra.mrb[4].mxu1 %vm394_vm0, %v773_v27 }
 0x881   : > { %1195 = vmatpush3.bf16.msra.mxu1 %v1267_v26  ;;  %1210 = vmatprep.mubr.msk.bf16.mxu1 %vm1352_vm1, %v1351_v8 }
 0x882   : > { %1196 = vmatprep.subr.bf16.mxu1 %v1351_v8 }
 0x885   : > { %1197 = vmatpush3.bf16.msra.mxu1 %v1268_v28 }
 0x886   : > { %1198 = vmatprep.subr.bf16.mxu1 %v1351_v8 }
 0x889   : > { %1199 = vmatpush3.bf16.msra.mxu1 %v1269_v29 }
 0x88a   : > { %1200 = vmatprep.subr.bf16.mxu1 %v1351_v8 }
 0x88d   : > { %1201 = vmatpush3.bf16.msra.mxu1 %v1270_v30 }
 0x88e   : > { %1202 = vmatprep.subr.bf16.mxu1 %v1351_v8 }
 0x891   : > { %1203 = vmatpush3.bf16.msra.mxu1 %v1271_v31 }
 0x892   : > { %1204 = vmatprep.subr.bf16.mxu1 %v1351_v8 }
 0x895   : > { %1205 = vmatpush3.bf16.msra.mxu1 %v1272_v32 }
 0x896   : > { %1206 = vmatprep.subr.bf16.mxu1 %v1351_v8 }
 0x899   : > { %1207 = vmatpush3.bf16.msra.mxu1 %v1273_v33 }
 0x89a   : > { %1208 = vmatprep.subr.bf16.mxu1 %v1351_v8  ;;  %v1102_v8 = vld [vmem:[%s1662_s2 + $0x3] ss:$0 sm:$0xff] }
 0x89d   : > { %1209 = vmatpush3.bf16.msra.mxu1 %v1274_v34 }
 0x953   : > { %v834_v36 = vpop.f32.mrb[4].mxu1 }
 0x954   : > { %v835_v37 = vadd.f32 %v1098_v35, %v834_v36  ;;  %v1192_v38 = vpop.f32.mrb[5].mxu1 }
 0x955   : > { %v837_v39 = vpop.f32.mrb[6].mxu1 }
 0x956   : > { %v840_v40 = vmax.f32 %v835_v37, 0.0  ;;  %v1193_v41 = vpop.f32.mrb[7].mxu1 }
 0x958   : > { %v841_v42 = vpack.c.bf16 %v840_v40, %v840_v40 }
 0x95a   : > { %1211 = vmatmul.mubr.bf16.vlgmr.msra.gmra.mrb[8].mxu1 %v841_v42 }
 0xa2d   : > { %v944_v43 = vpop.f32.mrb[8].mxu1 }
 0xa2e   : > { %v945_v44 = vadd.f32 %v1102_v8, %v944_v43  ;;  %v1212_v45 = vpop.f32.mrb[9].mxu1 }
 0xa2f   : > { %v947_v46 = vpop.f32.mrb[10].mxu1 }
 0xa30   : > { %v1213_v47 = vpop.f32.mrb[11].mxu1  ;;  %v950_v48 = vadd.f32 %v945_v44, %v772_v25 }
 0xa32   : > { %v951_v49 = vsel %vm394_vm0, %v950_v48, 0.0 }
 0xa33   : > { %952 = vadd.xlane.f32.xlu1 %v951_v49 }
 0xac0   : > { %v953_v50 = vpop.xlane.xlu1 %952 }
 0xac1   : > { %v954_v51 = vmul.f32 0.03125, %v953_v50 }
 0xac3   : > { %v955_v52 = vsub.f32 %v950_v48, %v954_v51 }
 0xac5   : > { %v956_v53 = vmul.f32 %v955_v52, %v955_v52 }
 0xac7   : > { %v957_v54 = vsel %vm394_vm0, %v956_v53, 0.0 }
 0xac8   : > { %958 = vadd.xlane.f32.xlu1 %v957_v54 }
 0xb55   : > { %v959_v55 = vpop.xlane.xlu1 %958 }
 0xb56   : > { %v960_v56 = vmul.f32 0.03125, %v959_v55 }
 0xb58   : > { %v961_v57 = vadd.f32 1e-05, %v960_v56 }
 0xb5a   : > { %1283 = vrsqrt.f32 %v961_v57 }
 0xb64   : > { %v1284_v58 = vpop.eup %1283 }
 0xb65   : > { %v963_v60 = vmul.f32 %v1284_v58, %v955_v52 }
 0xb67   : > { %v968_v62 = vmul.f32 %v1111_v59, %v963_v60 }
 0xb69   : > { %v973_v63 = vadd.f32 %v1112_v61, %v968_v62 }
 0xb6b   : > { %v974_v0 = vsel %vm394_vm0, %v973_v63, 0.0 }
 0xb6c   : > { %975 = vadd.xlane.f32.xlu1 %v974_v0 }
 0xbf9   : > { %v976_v1 = vpop.xlane.xlu1 %975 }
 0xbfa   : > { %v977_v2 = vmul.f32 0.03125, %v976_v1 }
 0xbfc   : > { %v978_v3 = vsub.f32 %v973_v63, %v977_v2 }
 0xbfe   : > { %v979_v4 = vmul.f32 %v978_v3, %v978_v3 }
 0xc00   : > { %v980_v5 = vsel %vm394_vm0, %v979_v4, 0.0 }
 0xc01   : > { %981 = vadd.xlane.f32.xlu1 %v980_v5 }
 0xc8e   : > { %v982_v6 = vpop.xlane.xlu1 %981 }
 0xc8f   : > { %v983_v7 = vmul.f32 0.03125, %v982_v6 }
 0xc91   : > { %v984_v9 = vadd.f32 1e-05, %v983_v7 }
 0xc93   : > { %1285 = vrsqrt.f32 %v984_v9 }
 0xc9d   : > { %v1286_v10 = vpop.eup %1285 }
 0xc9e   : > { %v986_v12 = vmul.f32 %v1286_v10, %v978_v3 }
 0xca0   : > { %v991_v14 = vmul.f32 %v1113_v11, %v986_v12 }
 0xca2   : > { %v996_v15 = vadd.f32 %v1114_v13, %v991_v14 }
 0xca4   : > { %997 = vst.msk [vmem:[%s377_s12] sm:$0xff] %vm394_vm0, %v996_v15 }
 0xca5   : > { %1300 = shalt.err (!%p1297_p3)
}
 0xca6   : > { %s1301_s0 = scalar_lea.hbm %s1617_s1, 128  ;;  %s1305_s30 = scalar_lea.hbm %s1671_s11, 256 }
 0xca7   : > { %p1302_p4 = scmp.ne.s32.totalorder %s1617_s1, %s1301_s0  ;;  %p1306_p9 = scmp.lt.u32.totalorder %s1617_s1, %s1671_s11 }
 0xca8   : > { %p1307_p10 = scmp.lt.u32.totalorder %s1305_s30, %s1301_s0  ;;  %p1309_p12 = scmp.lt.u32.totalorder %s1301_s0, %s1617_s1 }
 0xca9   : > { %p1303_p7 = pnand %p1302_p4, %p1454_p5 }
 0xcaa   : > { %p1308_p11 = por %p1307_p10, %p1306_p9 }
 0xcab   : > { %p1304_p8 = pneg %p1303_p7 }
 0xcac   : > { %p1310_p13 = por %p1309_p12, %p1308_p11 }
 0xcae   : > { %p1311_p0 = pnand %p1310_p13, %p1304_p8 }
 0xcb0   : > { %1314 = shalt.err (!%p1311_p0)
}
 0xcb1   : > { %1214 = dma.vmem_to_hbm [thread:$0]  (%p1454_p5), %s1619_s13, 128, %s1617_s1, %s999_s22  }
 0xcb2 PF: > { %p1220_p1 = scmp.ge.s32.totalorder %s1349_s20, 2  ;;  %s1024_s24 = sand.u32 1, %s1337_s17  }
 0xcb3   : > { %s1025_s21 = scalar_lea.sflag [#allocation3], %s1024_s24 }
 0xcb4   : > { %p1217_p2 = pnand %p1220_p1, %p1458_p6 }
 0xcb6   : > { %1332 = dma.done.wait (!%p1217_p2), %s1025_s21, 128  }
 0xcb7   : > { %1334 = vsyncadd (!%p1217_p2), %s1025_s21, 4294967168  ;;  %p21_p3 = scmp.ge.s32.totalorder %s1441_s23, 4   ;;  %s1678_s17 = smov %s1341_s18 }
 0xcb8   : > { %s1679_s18 = smov %s1345_s19  ;;  %s1680_s19 = smov %s1452_s26 }
 0xcb9   : > { %s1681_s20 = smov %s1441_s23  ;;  %23 = sbr.rel (!%p21_p3) target bundleno = 6 (0x6), region = 99 }
 0xcc0   :  { %1030 = vsyncpa [#allocation3], 1 }
 0xcc1   :  { %1032 = vsyncpa [#allocation3 + $0x1], 1 }

</bundles_post_ra>
